<compile_context>
chip_gen: v5e
topology: v5e:2x2
jax: 0.10.0
libtpu: 0.0.40
codegen_flags: <defaults>
</compile_context>

<pallas_src>
import jax
import jax.numpy as jnp
from jax import lax
from jax.experimental import pallas as pl
from jax.experimental.pallas import tpu as pltpu


# ------------------------------- kernel -------------------------------------


def _make_encoder_kernel(B, H, W, Cin, Cout):
    """Fused conv1->BN->ReLU->conv2->BN->ReLU->maxpool kernel (B images/step)."""
    f32 = jnp.float32
    BH = B * H
    WCin = W * Cin
    WCout = W * Cout

    def kernel(x_ref, w1_ref, s1_ref, b1_ref, w2_ref, s2_ref, b2_ref,
               skip_ref, pool_ref, zm_ref):
        # Stack the B images of this grid step along the MXU M dimension.
        rows = x_ref[...].reshape(BH, WCin)                # bf16, (B*H, W*Cin)

        # Per-image vertical zero-padding masks for the ky=0/2 taps (rows that
        # would read across an image boundary after the roll).  One small i32
        # iota + two compares per step -- replaces the old per-step (H,H)
        # shift-matrix construction and its serial f32 MXU matmuls.
        r_idx = lax.broadcasted_iota(jnp.int32, (BH, WCout), 0) % H
        not_top = r_idx != 0            # output row has a row above it
        not_bot = r_idx != (H - 1)      # output row has a row below it

        def conv3x3_bn_relu(rows_bf16, w_ref, s_ref, b_ref):
            # w_ref[ky] is a block-banded (W*C_in_layer, W*Cout) matrix that
            # folds the three kx taps, so the full 3x3 conv is 3 wide bf16 MXU
            # pushes; the ky taps are combined with XLU sublane rolls plus the
            # boundary masks above (zero padding along H/W is implicit).
            y0 = jnp.dot(rows_bf16, w_ref[0], preferred_element_type=f32)
            y1 = jnp.dot(rows_bf16, w_ref[1], preferred_element_type=f32)
            y2 = jnp.dot(rows_bf16, w_ref[2], preferred_element_type=f32)
            acc = (y1
                   + jnp.where(not_top, pltpu.roll(y0, shift=1, axis=0), 0.0)
                   + jnp.where(not_bot, pltpu.roll(y2, shift=BH - 1, axis=0),
                               0.0))
            # Folded BatchNorm (inference) + ReLU; lane-dense f32 epilogue.
            return jnp.maximum(acc * s_ref[...] + b_ref[...], 0.0)

        h = conv3x3_bn_relu(rows, w1_ref, s1_ref, b1_ref)
        # Dropout2d(p=0.0) == identity (module default / eval mode).
        # TODO(synk): stochastic Dropout2d (p>0, training) not implemented.
        z = conv3x3_bn_relu(h.astype(jnp.bfloat16), w2_ref, s2_ref, b2_ref)

        skip_ref[...] = z.reshape(B, H, WCout)     # full 128-lane f32 store

        # 2x2 max pool, stride 2 -- rolls + strided row pick, no matmuls:
        #  row pairs : max(z, roll_up(z)); valid at even rows.  H is even so
        #              pairs never straddle an image boundary, and odd (wrapped)
        #              rows are never read, so no mask / no ReLU assumption.
        zm_ref[...] = jnp.maximum(z, pltpu.roll(z, shift=BH - 1, axis=0))
        #  even rows : HW sublane-strided load from the VMEM scratch (exact;
        #              replaces the old per-step row_pick iota + f32 matmul).
        zr = zm_ref[pl.ds(0, BH // 2, stride=2), :]
        #  col pairs : XLU lane roll by Cout + max; even-w lane blocks valid.
        zc = jnp.maximum(zr, pltpu.roll(zr, shift=WCout - Cout, axis=1))
        # Store all W*Cout lanes (unmasked full-lane vst); the wrapper strips
        # the odd-w junk lanes with a free slice on a tiny tensor.
        pool_ref[...] = zc.reshape(B, H // 2, WCout)

    return kernel


# ------------------------------ wrapper --------------------------------------


def _banded_conv_weights(w_hwio, W):
    """(3,3,Cin,Cout) HWIO conv weights -> (3, W*Cin, W*Cout) banded matrices B
    with B[ky][(w+kx-1)*Cin + ci, w*Cout + co] = w[ky, kx, ci, co]; entries with
    w+kx-1 outside [0, W) are dropped, which implements zero padding along W."""
    KH, KW, Cin, Cout = w_hwio.shape
    bands = []
    for ky in range(KH):
        b = jnp.zeros((W * Cin, W * Cout), jnp.float32)
        for kx in range(KW):
            e = jnp.eye(W, k=1 - kx, dtype=jnp.float32)   # ones at [w+kx-1, w]
            b = b + jnp.kron(e, w_hwio[ky, kx].astype(jnp.float32))
        bands.append(b)
    return jnp.stack(bands)


def _fold_bn(conv_b, gamma, beta, mean, var, eps=1e-5):
    scale = gamma / jnp.sqrt(var + eps)
    bias = (conv_b - mean) * scale + beta
    return scale, bias


def prepare_encoder_params(params, W):
    """Build kernel-ready derived parameters ONCE (banded bf16 conv weights and
    lane-tiled BN scale/bias).  Doing this per forward call would re-run the
    kron loops / tiles / casts in XLA ahead of a microsecond-scale kernel."""
    Cout = params["w1"].shape[-1]
    WCout = W * Cout
    tile = lambda v: jnp.tile(v.astype(jnp.float32), W).reshape(1, WCout)
    return {
        "w1b": _banded_conv_weights(params["w1"], W).astype(jnp.bfloat16),
        "w2b": _banded_conv_weights(params["w2"], W).astype(jnp.bfloat16),
        "s1": tile(params["s1"]), "b1": tile(params["b1"]),
        "s2": tile(params["s2"]), "b2": tile(params["b2"]),
    }


def _pick_batch_block(n, h, target_rows=128):
    """Images per grid step: fill the MXU M dimension (~target_rows rows) while
    keeping >= 2 grid steps when possible so both v7x TensorCores get work
    (v5e/v6e have one TC and simply benefit from the larger M block)."""
    cap = max(1, target_rows // h)
    best = 1
    for b in range(1, n + 1):
        if n % b == 0 and b <= cap and (n // b >= 2 or n == 1):
            best = b
    return best


def encoder_block_dropout(x_nchw, prep):
    """Forward of EncoderBlockDropout: returns (skip, downsampled), both NCHW."""
    N, Cin, H, W = x_nchw.shape
    WCout = prep["s1"].shape[1]
    Cout = WCout // W
    WCin = W * Cin
    assert H % 2 == 0 and W % 2 == 0, "MaxPool2d(2,2) needs even H and W"

    B = _pick_batch_block(N, H)
    steps = N // B

    # NCHW -> lane-dense (N, H, W*C) rows; bf16 MXU operands, f32 accumulate.
    x_rows = (jnp.transpose(x_nchw, (0, 2, 3, 1))
              .reshape(N, H, WCin).astype(jnp.bfloat16))

    skip_rows, pool_rows = pl.pallas_call(
        _make_encoder_kernel(B, H, W, Cin, Cout),
        out_shape=(
            jax.ShapeDtypeStruct((N, H, WCout), jnp.float32),
            jax.ShapeDtypeStruct((N, H // 2, WCout), jnp.float32),
        ),
        grid=(steps,),
        in_specs=[
            pl.BlockSpec((B, H, WCin), lambda n: (n, 0, 0)),
            pl.BlockSpec((3, WCin, WCout), lambda n: (0, 0, 0)),
            pl.BlockSpec((1, WCout), lambda n: (0, 0)),
            pl.BlockSpec((1, WCout), lambda n: (0, 0)),
            pl.BlockSpec((3, WCout, WCout), lambda n: (0, 0, 0)),
            pl.BlockSpec((1, WCout), lambda n: (0, 0)),
            pl.BlockSpec((1, WCout), lambda n: (0, 0)),
        ],
        out_specs=(
            pl.BlockSpec((B, H, WCout), lambda n: (n, 0, 0)),
            pl.BlockSpec((B, H // 2, WCout), lambda n: (n, 0, 0)),
        ),
        scratch_shapes=[pltpu.VMEM((B * H, WCout), jnp.float32)],
        compiler_params=pltpu.CompilerParams(
            dimension_semantics=("parallel",)),
    )(x_rows, prep["w1b"], prep["s1"], prep["b1"],
      prep["w2b"], prep["s2"], prep["b2"])

    skip = jnp.transpose(skip_rows.reshape(N, H, W, Cout), (0, 3, 1, 2))
    # Strip the odd-w junk lanes of the full-lane pooled slab (tiny tensor).
    pooled = pool_rows.reshape(N, H // 2, W // 2, 2, Cout)[:, :, :, 0, :]
    down = jnp.transpose(pooled, (0, 3, 1, 2))
    return skip, down


# ------------------------------ reference ------------------------------------


def _ref_encoder(x_nchw, params):
    """Pure-JAX reference mirroring the kernel numerics (bf16 MXU operands,
    f32 accumulation + f32 epilogue), so the comparison tolerance stays tight."""
    x = jnp.transpose(x_nchw, (0, 2, 3, 1)).astype(jnp.float32)

    def conv_bn_relu(inp, w, s, b):
        y = lax.conv_general_dilated(
            inp.astype(jnp.bfloat16), w.astype(jnp.bfloat16),
            window_strides=(1, 1), padding=((1, 1), (1, 1)),
            dimension_numbers=("NHWC", "HWIO", "NHWC"),
            preferred_element_type=jnp.float32)
        return jnp.maximum(y * s + b, 0.0)

    h = conv_bn_relu(x, params["w1"], params["s1"], params["b1"])
    h = conv_bn_relu(h, params["w2"], params["s2"], params["b2"])
    skip = jnp.transpose(h, (0, 3, 1, 2))
    pooled = lax.reduce_window(h, -jnp.inf, lax.max,
                               (1, 2, 2, 1), (1, 2, 2, 1), "VALID")
    return skip, jnp.transpose(pooled, (0, 3, 1, 2))


# -------------------------------- main ----------------------------------------


if __name__ == "__main__":
    key = jax.random.PRNGKey(0)
    # N=4 exercises both batch stacking (B=2 images per grid step) and the
    # >= 2 "parallel" grid steps wanted for v7x's two TensorCores.
    N, Cin, Cout, H, W = 4, 4, 8, 16, 16

    ks = jax.random.split(key, 12)
    # Conv weights in HWIO layout (torch OIHW transposed), plus conv biases.
    w1 = jax.random.normal(ks[0], (3, 3, Cin, Cout), jnp.float32) * 0.1
    cb1 = jax.random.normal(ks[1], (Cout,), jnp.float32) * 0.1
    w2 = jax.random.normal(ks[2], (3, 3, Cout, Cout), jnp.float32) * 0.1
    cb2 = jax.random.normal(ks[3], (Cout,), jnp.float32) * 0.1
    # BatchNorm (inference) parameters / running stats.
    g1 = 1.0 + 0.1 * jax.random.normal(ks[4], (Cout,), jnp.float32)
    be1 = 0.1 * jax.random.normal(ks[5], (Cout,), jnp.float32)
    m1 = 0.1 * jax.random.normal(ks[6], (Cout,), jnp.float32)
    v1 = jnp.abs(jax.random.normal(ks[7], (Cout,), jnp.float32)) + 0.5
    g2 = 1.0 + 0.1 * jax.random.normal(ks[8], (Cout,), jnp.float32)
    be2 = 0.1 * jax.random.normal(ks[9], (Cout,), jnp.float32)
    m2 = 0.1 * jax.random.normal(ks[10], (Cout,), jnp.float32)
    v2 = jnp.abs(jax.random.normal(ks[11], (Cout,), jnp.float32)) + 0.5

    s1, fb1 = _fold_bn(cb1, g1, be1, m1, v1)
    s2, fb2 = _fold_bn(cb2, g2, be2, m2, v2)
    params = {"w1": w1, "s1": s1, "b1": fb1, "w2": w2, "s2": s2, "b2": fb2}

    # Derived params computed ONCE (not per forward call).
    prep = prepare_encoder_params(params, W)

    x = jax.random.normal(jax.random.PRNGKey(42), (N, Cin, H, W), jnp.float32)

    fwd = jax.jit(encoder_block_dropout)
    skip, down = fwd(x, prep)
    jax.block_until_ready((skip, down))

    ref_skip, ref_down = _ref_encoder(x, params)
    assert skip.shape == (N, Cout, H, W)
    assert down.shape == (N, Cout, H // 2, W // 2)
    # bf16 MXU operands => compare against the bf16-mirrored reference (vs a
    # pure-f32 / PyTorch forward the deviation is the usual ~1e-2 bf16 rounding).
    assert jnp.allclose(skip, ref_skip, rtol=2e-3, atol=2e-3), float(
        jnp.max(jnp.abs(skip - ref_skip)))
    assert jnp.allclose(down, ref_down, rtol=2e-3, atol=2e-3), float(
        jnp.max(jnp.abs(down - ref_down)))

    print("KERNEL_OK")
</pallas_src>

<mosaic_0001>
module attributes {stable_mosaic.version = 11 : i64} {
  func.func @kernel(%arg0: i32, %arg1: memref<2x16x64xbf16, #tpu.memory_space<vmem>>, %arg2: memref<3x64x128xbf16, #tpu.memory_space<vmem>>, %arg3: memref<1x128xf32, #tpu.memory_space<vmem>>, %arg4: memref<1x128xf32, #tpu.memory_space<vmem>>, %arg5: memref<3x128x128xbf16, #tpu.memory_space<vmem>>, %arg6: memref<1x128xf32, #tpu.memory_space<vmem>>, %arg7: memref<1x128xf32, #tpu.memory_space<vmem>>, %arg8: memref<2x16x128xf32, #tpu.memory_space<vmem>>, %arg9: memref<2x8x128xf32, #tpu.memory_space<vmem>>, %arg10: memref<32x128xf32, #tpu.memory_space<vmem>>) attributes {dimension_semantics = [#tpu.dimension_semantics<parallel>], iteration_bounds = array<i64: 2>, scalar_prefetch = 0 : i64, scratch_operands = 1 : i64, tpu.core_type = #tpu.core_type<tc>, window_params = [{transform_indices = @transform_0, window_bounds = array<i64: 2, 16, 64>}, {pipeline_mode = #tpu.pipeline_mode<synchronous>, transform_indices = @transform_1, window_bounds = array<i64: 3, 64, 128>}, {pipeline_mode = #tpu.pipeline_mode<synchronous>, transform_indices = @transform_2, window_bounds = array<i64: 1, 128>}, {pipeline_mode = #tpu.pipeline_mode<synchronous>, transform_indices = @transform_3, window_bounds = array<i64: 1, 128>}, {pipeline_mode = #tpu.pipeline_mode<synchronous>, transform_indices = @transform_4, window_bounds = array<i64: 3, 128, 128>}, {pipeline_mode = #tpu.pipeline_mode<synchronous>, transform_indices = @transform_5, window_bounds = array<i64: 1, 128>}, {pipeline_mode = #tpu.pipeline_mode<synchronous>, transform_indices = @transform_6, window_bounds = array<i64: 1, 128>}, {transform_indices = @transform_7, window_bounds = array<i64: 2, 16, 128>}, {transform_indices = @transform_8, window_bounds = array<i64: 2, 8, 128>}]} {
    %c0 = arith.constant 0 : index
    %c0_0 = arith.constant 0 : index
    %c0_1 = arith.constant 0 : index
    %0 = vector.load %arg1[%c0, %c0_0, %c0_1] : memref<2x16x64xbf16, #tpu.memory_space<vmem>>, vector<2x16x64xbf16>
    %1 = vector.shape_cast %0 : vector<2x16x64xbf16> to vector<32x64xbf16>
    %2 = tpu.iota {dimensions = array<i32: 0>} : vector<32x128xi32>
    %c16_i32 = arith.constant 16 : i32
    %c0_i32 = arith.constant 0 : i32
    %3 = arith.cmpi eq, %c16_i32, %c0_i32 : i32
    %c1_i32 = arith.constant 1 : i32
    %4 = arith.select %3, %c1_i32, %c16_i32 : i32
    %5 = vector.broadcast %4 : i32 to vector<32x128xi32>
    %6 = arith.remsi %2, %5 : vector<32x128xi32>
    %c0_i32_2 = arith.constant 0 : i32
    %7 = vector.broadcast %c0_i32_2 : i32 to vector<32x128xi32>
    %8 = arith.cmpi ne, %6, %7 : vector<32x128xi32>
    %c0_i32_3 = arith.constant 0 : i32
    %9 = vector.broadcast %c0_i32_3 : i32 to vector<32x128xi32>
    %10 = arith.cmpi slt, %6, %9 : vector<32x128xi32>
    %c0_i32_4 = arith.constant 0 : i32
    %11 = arith.cmpi slt, %4, %c0_i32_4 : i32
    %12 = vector.broadcast %11 : i1 to vector<32x128xi1>
    %13 = vector.broadcast %12 : vector<32x128xi1> to vector<32x128xi1>
    %14 = arith.xori %10, %13 : vector<32x128xi1>
    %15 = arith.andi %14, %8 : vector<32x128xi1>
    %16 = vector.broadcast %4 : i32 to vector<32x128xi32>
    %17 = arith.addi %6, %16 : vector<32x128xi32>
    %18 = arith.select %15, %17, %6 : vector<32x128xi1>, vector<32x128xi32>
    %c0_i32_5 = arith.constant 0 : i32
    %19 = vector.broadcast %c0_i32_5 : i32 to vector<32x128xi32>
    %20 = arith.cmpi ne, %18, %19 : vector<32x128xi32>
    %c15_i32 = arith.constant 15 : i32
    %21 = vector.broadcast %c15_i32 : i32 to vector<32x128xi32>
    %22 = arith.cmpi ne, %18, %21 : vector<32x128xi32>
    %c0_6 = arith.constant 0 : index
    %c0_7 = arith.constant 0 : index
    %c0_8 = arith.constant 0 : index
    %23 = vector.load %arg2[%c0_6, %c0_7, %c0_8] : memref<3x64x128xbf16, #tpu.memory_space<vmem>>, vector<1x64x128xbf16>
    %24 = vector.shape_cast %23 : vector<1x64x128xbf16> to vector<64x128xbf16>
    %cst = arith.constant dense<0.000000e+00> : vector<32x128xf32>
    %25 = tpu.matmul %1, %24, %cst {dimension_numbers = #tpu.dot_dimension_numbers<[1], [0], [0], [1], [0, 0, 1, 1], [], []>} : vector<32x64xbf16>, vector<64x128xbf16>, vector<32x128xf32> -> vector<32x128xf32>
    %c1 = arith.constant 1 : index
    %c0_9 = arith.constant 0 : index
    %c0_10 = arith.constant 0 : index
    %26 = vector.load %arg2[%c1, %c0_9, %c0_10] : memref<3x64x128xbf16, #tpu.memory_space<vmem>>, vector<1x64x128xbf16>
    %27 = vector.shape_cast %26 : vector<1x64x128xbf16> to vector<64x128xbf16>
    %cst_11 = arith.constant dense<0.000000e+00> : vector<32x128xf32>
    %28 = tpu.matmul %1, %27, %cst_11 {dimension_numbers = #tpu.dot_dimension_numbers<[1], [0], [0], [1], [0, 0, 1, 1], [], []>} : vector<32x64xbf16>, vector<64x128xbf16>, vector<32x128xf32> -> vector<32x128xf32>
    %c2 = arith.constant 2 : index
    %c0_12 = arith.constant 0 : index
    %c0_13 = arith.constant 0 : index
    %29 = vector.load %arg2[%c2, %c0_12, %c0_13] : memref<3x64x128xbf16, #tpu.memory_space<vmem>>, vector<1x64x128xbf16>
    %30 = vector.shape_cast %29 : vector<1x64x128xbf16> to vector<64x128xbf16>
    %cst_14 = arith.constant dense<0.000000e+00> : vector<32x128xf32>
    %31 = tpu.matmul %1, %30, %cst_14 {dimension_numbers = #tpu.dot_dimension_numbers<[1], [0], [0], [1], [0, 0, 1, 1], [], []>} : vector<32x64xbf16>, vector<64x128xbf16>, vector<32x128xf32> -> vector<32x128xf32>
    %c1_i32_15 = arith.constant 1 : i32
    %32 = tpu.dynamic_rotate %25 by %c1_i32_15 dim 0 : vector<32x128xf32>, i32 -> vector<32x128xf32>
    %cst_16 = arith.constant 0.000000e+00 : f32
    %33 = vector.broadcast %cst_16 : f32 to vector<32x128xf32>
    %34 = arith.select %20, %32, %33 : vector<32x128xi1>, vector<32x128xf32>
    %35 = arith.addf %28, %34 : vector<32x128xf32>
    %c31_i32 = arith.constant 31 : i32
    %36 = tpu.dynamic_rotate %31 by %c31_i32 dim 0 : vector<32x128xf32>, i32 -> vector<32x128xf32>
    %cst_17 = arith.constant 0.000000e+00 : f32
    %37 = vector.broadcast %cst_17 : f32 to vector<32x128xf32>
    %38 = arith.select %22, %36, %37 : vector<32x128xi1>, vector<32x128xf32>
    %39 = arith.addf %35, %38 : vector<32x128xf32>
    %c0_18 = arith.constant 0 : index
    %c0_19 = arith.constant 0 : index
    %40 = vector.load %arg3[%c0_18, %c0_19] : memref<1x128xf32, #tpu.memory_space<vmem>>, vector<1x128xf32>
    %41 = vector.broadcast %40 : vector<1x128xf32> to vector<32x128xf32>
    %42 = arith.mulf %39, %41 : vector<32x128xf32>
    %c0_20 = arith.constant 0 : index
    %c0_21 = arith.constant 0 : index
    %43 = vector.load %arg4[%c0_20, %c0_21] : memref<1x128xf32, #tpu.memory_space<vmem>>, vector<1x128xf32>
    %44 = vector.broadcast %43 : vector<1x128xf32> to vector<32x128xf32>
    %45 = arith.addf %42, %44 : vector<32x128xf32>
    %cst_22 = arith.constant 0.000000e+00 : f32
    %46 = vector.broadcast %cst_22 : f32 to vector<32x128xf32>
    %47 = arith.maximumf %45, %46 : vector<32x128xf32>
    %48 = arith.truncf %47 : vector<32x128xf32> to vector<32x128xbf16>
    %c0_23 = arith.constant 0 : index
    %c0_24 = arith.constant 0 : index
    %c0_25 = arith.constant 0 : index
    %49 = vector.load %arg5[%c0_23, %c0_24, %c0_25] : memref<3x128x128xbf16, #tpu.memory_space<vmem>>, vector<1x128x128xbf16>
    %50 = vector.shape_cast %49 : vector<1x128x128xbf16> to vector<128x128xbf16>
    %cst_26 = arith.constant dense<0.000000e+00> : vector<32x128xf32>
    %51 = tpu.matmul %48, %50, %cst_26 {dimension_numbers = #tpu.dot_dimension_numbers<[1], [0], [0], [1], [0, 0, 1, 1], [], []>} : vector<32x128xbf16>, vector<128x128xbf16>, vector<32x128xf32> -> vector<32x128xf32>
    %c1_27 = arith.constant 1 : index
    %c0_28 = arith.constant 0 : index
    %c0_29 = arith.constant 0 : index
    %52 = vector.load %arg5[%c1_27, %c0_28, %c0_29] : memref<3x128x128xbf16, #tpu.memory_space<vmem>>, vector<1x128x128xbf16>
    %53 = vector.shape_cast %52 : vector<1x128x128xbf16> to vector<128x128xbf16>
    %cst_30 = arith.constant dense<0.000000e+00> : vector<32x128xf32>
    %54 = tpu.matmul %48, %53, %cst_30 {dimension_numbers = #tpu.dot_dimension_numbers<[1], [0], [0], [1], [0, 0, 1, 1], [], []>} : vector<32x128xbf16>, vector<128x128xbf16>, vector<32x128xf32> -> vector<32x128xf32>
    %c2_31 = arith.constant 2 : index
    %c0_32 = arith.constant 0 : index
    %c0_33 = arith.constant 0 : index
    %55 = vector.load %arg5[%c2_31, %c0_32, %c0_33] : memref<3x128x128xbf16, #tpu.memory_space<vmem>>, vector<1x128x128xbf16>
    %56 = vector.shape_cast %55 : vector<1x128x128xbf16> to vector<128x128xbf16>
    %cst_34 = arith.constant dense<0.000000e+00> : vector<32x128xf32>
    %57 = tpu.matmul %48, %56, %cst_34 {dimension_numbers = #tpu.dot_dimension_numbers<[1], [0], [0], [1], [0, 0, 1, 1], [], []>} : vector<32x128xbf16>, vector<128x128xbf16>, vector<32x128xf32> -> vector<32x128xf32>
    %c1_i32_35 = arith.constant 1 : i32
    %58 = tpu.dynamic_rotate %51 by %c1_i32_35 dim 0 : vector<32x128xf32>, i32 -> vector<32x128xf32>
    %cst_36 = arith.constant 0.000000e+00 : f32
    %59 = vector.broadcast %cst_36 : f32 to vector<32x128xf32>
    %60 = arith.select %20, %58, %59 : vector<32x128xi1>, vector<32x128xf32>
    %61 = arith.addf %54, %60 : vector<32x128xf32>
    %c31_i32_37 = arith.constant 31 : i32
    %62 = tpu.dynamic_rotate %57 by %c31_i32_37 dim 0 : vector<32x128xf32>, i32 -> vector<32x128xf32>
    %cst_38 = arith.constant 0.000000e+00 : f32
    %63 = vector.broadcast %cst_38 : f32 to vector<32x128xf32>
    %64 = arith.select %22, %62, %63 : vector<32x128xi1>, vector<32x128xf32>
    %65 = arith.addf %61, %64 : vector<32x128xf32>
    %c0_39 = arith.constant 0 : index
    %c0_40 = arith.constant 0 : index
    %66 = vector.load %arg6[%c0_39, %c0_40] : memref<1x128xf32, #tpu.memory_space<vmem>>, vector<1x128xf32>
    %67 = vector.broadcast %66 : vector<1x128xf32> to vector<32x128xf32>
    %68 = arith.mulf %65, %67 : vector<32x128xf32>
    %c0_41 = arith.constant 0 : index
    %c0_42 = arith.constant 0 : index
    %69 = vector.load %arg7[%c0_41, %c0_42] : memref<1x128xf32, #tpu.memory_space<vmem>>, vector<1x128xf32>
    %70 = vector.broadcast %69 : vector<1x128xf32> to vector<32x128xf32>
    %71 = arith.addf %68, %70 : vector<32x128xf32>
    %cst_43 = arith.constant 0.000000e+00 : f32
    %72 = vector.broadcast %cst_43 : f32 to vector<32x128xf32>
    %73 = arith.maximumf %71, %72 : vector<32x128xf32>
    %74 = vector.shape_cast %73 : vector<32x128xf32> to vector<2x16x128xf32>
    %c0_44 = arith.constant 0 : index
    %c0_45 = arith.constant 0 : index
    %c0_46 = arith.constant 0 : index
    %75 = vector.load %arg8[%c0_44, %c0_45, %c0_46] : memref<2x16x128xf32, #tpu.memory_space<vmem>>, vector<2x16x128xf32>
    tpu.vector_store %arg8[%c0_44, %c0_45, %c0_46], %74 {strides = array<i32>} : memref<2x16x128xf32, #tpu.memory_space<vmem>>, vector<2x16x128xf32>,
    %c31_i32_47 = arith.constant 31 : i32
    %76 = tpu.dynamic_rotate %73 by %c31_i32_47 dim 0 : vector<32x128xf32>, i32 -> vector<32x128xf32>
    %77 = arith.maximumf %73, %76 : vector<32x128xf32>
    %c0_48 = arith.constant 0 : index
    %c0_49 = arith.constant 0 : index
    %78 = vector.load %arg10[%c0_48, %c0_49] : memref<32x128xf32, #tpu.memory_space<vmem>>, vector<32x128xf32>
    tpu.vector_store %arg10[%c0_48, %c0_49], %77 {strides = array<i32>} : memref<32x128xf32, #tpu.memory_space<vmem>>, vector<32x128xf32>,
    %c0_50 = arith.constant 0 : index
    %c0_51 = arith.constant 0 : index
    %79 = tpu.strided_load %arg10[%c0_50, %c0_51] {strides = array<i32: 2, 1>} : memref<32x128xf32, #tpu.memory_space<vmem>>, vector<16x128xf32>
    %c120_i32 = arith.constant 120 : i32
    %80 = tpu.dynamic_rotate %79 by %c120_i32 dim 1 : vector<16x128xf32>, i32 -> vector<16x128xf32>
    %81 = arith.maximumf %79, %80 : vector<16x128xf32>
    %82 = vector.shape_cast %81 : vector<16x128xf32> to vector<2x8x128xf32>
    %c0_52 = arith.constant 0 : index
    %c0_53 = arith.constant 0 : index
    %c0_54 = arith.constant 0 : index
    %83 = vector.load %arg9[%c0_52, %c0_53, %c0_54] : memref<2x8x128xf32, #tpu.memory_space<vmem>>, vector<2x8x128xf32>
    tpu.vector_store %arg9[%c0_52, %c0_53, %c0_54], %82 {strides = array<i32>} : memref<2x8x128xf32, #tpu.memory_space<vmem>>, vector<2x8x128xf32>,
    return
  }
  func.func @transform_0(%arg0: i32) -> (i32, i32, i32) {
    %c0_i32 = arith.constant 0 : i32
    %c0_i32_0 = arith.constant 0 : i32
    %c0_i32_1 = arith.constant 0 : i32
    return %arg0, %c0_i32, %c0_i32_0 : i32, i32, i32
  }
  func.func @transform_1(%arg0: i32) -> (i32, i32, i32) {
    %c0_i32 = arith.constant 0 : i32
    %c0_i32_0 = arith.constant 0 : i32
    %c0_i32_1 = arith.constant 0 : i32
    %c0_i32_2 = arith.constant 0 : i32
    return %c0_i32, %c0_i32_0, %c0_i32_1 : i32, i32, i32
  }
  func.func @transform_2(%arg0: i32) -> (i32, i32) {
    %c0_i32 = arith.constant 0 : i32
    %c0_i32_0 = arith.constant 0 : i32
    %c0_i32_1 = arith.constant 0 : i32
    return %c0_i32, %c0_i32_0 : i32, i32
  }
  func.func @transform_3(%arg0: i32) -> (i32, i32) {
    %c0_i32 = arith.constant 0 : i32
    %c0_i32_0 = arith.constant 0 : i32
    %c0_i32_1 = arith.constant 0 : i32
    return %c0_i32, %c0_i32_0 : i32, i32
  }
  func.func @transform_4(%arg0: i32) -> (i32, i32, i32) {
    %c0_i32 = arith.constant 0 : i32
    %c0_i32_0 = arith.constant 0 : i32
    %c0_i32_1 = arith.constant 0 : i32
    %c0_i32_2 = arith.constant 0 : i32
    return %c0_i32, %c0_i32_0, %c0_i32_1 : i32, i32, i32
  }
  func.func @transform_5(%arg0: i32) -> (i32, i32) {
    %c0_i32 = arith.constant 0 : i32
    %c0_i32_0 = arith.constant 0 : i32
    %c0_i32_1 = arith.constant 0 : i32
    return %c0_i32, %c0_i32_0 : i32, i32
  }
  func.func @transform_6(%arg0: i32) -> (i32, i32) {
    %c0_i32 = arith.constant 0 : i32
    %c0_i32_0 = arith.constant 0 : i32
    %c0_i32_1 = arith.constant 0 : i32
    return %c0_i32, %c0_i32_0 : i32, i32
  }
  func.func @transform_7(%arg0: i32) -> (i32, i32, i32) {
    %c0_i32 = arith.constant 0 : i32
    %c0_i32_0 = arith.constant 0 : i32
    %c0_i32_1 = arith.constant 0 : i32
    return %arg0, %c0_i32, %c0_i32_0 : i32, i32, i32
  }
  func.func @transform_8(%arg0: i32) -> (i32, i32, i32) {
    %c0_i32 = arith.constant 0 : i32
    %c0_i32_0 = arith.constant 0 : i32
    %c0_i32_1 = arith.constant 0 : i32
    return %arg0, %c0_i32, %c0_i32_0 : i32, i32, i32
  }
}

</mosaic_0001>

<bundles_post_ra>
// kernel: encoder_block_dropout.1
= control target key start
LH: loop header
LB: loop body
LE: loop exit
PB: predicated region body
PF: predicated region fallthrough
CT: control target
= control target key end

     0   :  { %s1376_s27 = smov 0   ;;  %s1613_s0 = inlined_call_operand.vmem [shape: bf16[4,16,64], index: 0, kind: input, shape index: {}]   ;;  %s1614_s1 = inlined_call_operand.vmem [shape: bf16[3,64,128], index: 1, kind: input, shape index: {}]   ;;  %s1615_s2 = inlined_call_operand.vmem [shape: f32[1,128], index: 2, kind: input, shape index: {}]   ;;  %s1616_s3 = inlined_call_operand.vmem [shape: f32[1,128], index: 3, kind: input, shape index: {}]   ;;  %s1617_s4 = inlined_call_operand.vmem [shape: bf16[3,128,128], index: 4, kind: input, shape index: {}]   ;;  %s1618_s5 = inlined_call_operand.vmem [shape: f32[1,128], index: 5, kind: input, shape index: {}]   ;;  %s1619_s6 = inlined_call_operand.vmem [shape: f32[1,128], index: 6, kind: input, shape index: {}]   ;;  %s1620_s7 = inlined_call_operand.vmem [shape: f32[4,16,128], index: 7, kind: output, shape index: {0}]   ;;  %s1621_s8 = inlined_call_operand.vmem [shape: f32[4,8,128], index: 8, kind: output, shape index: {1}]  }
   0x1 LB: > { %s1040_s28 = sadd.s32 4294967295, %s1328_s27   ;;  %p1044_p0 = scmp.ge.s32.totalorder %s1328_s27, 1  ;;  %s1328_s27 = sphi %s1376_s27, %s19_s27  }
   0x2   : > { %p267_p1 = scmp.lt.s32.totalorder %s1328_s27, 3 }
   0x4   : > { %p268_p2 = pnand %p1044_p0, %p267_p1 }
   0x5   : > { %s1045_s13 = sshll.u32 (!%p268_p2), %s1040_s28, 1  ;;  %s1330_s19 = smov (!%p268_p2), 120  }
   0x6   : > { %271 = sbr.rel (%p268_p2) target bundleno = 502 (0x1f6), region = 48  ;;  %p309_p3 = scmp.lt.s32.totalorder (!%p268_p2), %s1045_s13, 3 }
   0xb   : > { %v1268_v0 = vld [vmem:[%s1614_s1 + $0x18] sm:$0xff]  ;;  %v1267_v3 = vld [vmem:[%s1614_s1 + $0x10] sm:$0xff]  ;;  %s1631_s13 = smov (!%p309_p3, %s1045_s13), 3  ;;  %v1266_v6 = vld [vmem:[%s1614_s1 + $0x8] sm:$0xff]  ;;  %vm436_vm0 = vcmask 523264   ;;  %v333_v40 = vlaneseq }
   0xc   : > { %v1276_v1 = vld [vmem:[%s1614_s1 + $0x58] sm:$0xff]  ;;  %447 = vmatpush.bf16.msra.mxu0 %v1268_v0  ;;  %v1275_v4 = vld [vmem:[%s1614_s1 + $0x50] sm:$0xff]  ;;  %v1274_v7 = vld [vmem:[%s1614_s1 + $0x48] sm:$0xff]  ;;  %s1261_s26 = sshll.u32 %s1631_s13, 3  ;;  %s1262_s15 = sshll.u32 %s1631_s13, 4 }
   0xd   : > { %v1272_v2 = vld [vmem:[%s1614_s1 + $0x38] sm:$0xff]  ;;  %508 = vmatpush.bf16.msra.mxu1 %v1276_v1  ;;  %v1271_v5 = vld [vmem:[%s1614_s1 + $0x30] sm:$0xff]  ;;  %v1270_v8 = vld [vmem:[%s1614_s1 + $0x28] sm:$0xff]  ;;  %s313_s12 = scalar_lea.vmem %s1613_s0, %s1261_s26  ;;  %v1502_v44 = vshrl.u32 %v333_v40, 7  ;;  %s1573_s18 = scalar_lea.vmem %s1620_s7, %s1262_s15 }
   0xe   : > { %564 = vmatpush.bf16.msra.mxu2 %v1272_v2  ;;  %v1265_v9 = vld [vmem:[%s1614_s1] sm:$0xff]  ;;  %v1264_v13 = vld [vmem:[%s313_s12 + $0x8] sm:$0xff]  ;;  %v1284_v14 = vld [vmem:[%s1617_s4 + $0x38] sm:$0xff]  ;;  %s326_s22 = scalar_lea.vmem %s1621_s8, %s1261_s26 }
   0xf   : > { %v1273_v10 = vld [vmem:[%s1614_s1 + $0x40] sm:$0xff]  ;;  %v1300_v15 = vld [vmem:[%s1617_s4 + $0xb8] sm:$0xff]  ;;  %682 = vmatpush.bf16.msra.mxu3 %v1284_v14  ;;  %v1283_v17 = vld [vmem:[%s1617_s4 + $0x30] sm:$0xff]  ;;  %v335_v45 = vadd.s32 8, %v1502_v44  ;;  %v336_v46 = vadd.s32 16, %v1502_v44  ;;  %vm583_vm1 = vcmp.lt.s32.totalorder %v1502_v44, 7 }
  0x10   : > { %448 = vmatpush.bf16.msra.mxu0 %v1267_v3  ;;  %v1269_v11 = vld [vmem:[%s1614_s1 + $0x20] sm:$0xff]  ;;  %v1292_v16 = vld [vmem:[%s1617_s4 + $0x78] sm:$0xff]  ;;  %v1299_v18 = vld [vmem:[%s1617_s4 + $0xb0] sm:$0xff]  ;;  %vm527_vm2 = vcmp.lt.s32.totalorder %v1502_v44, 1  ;;  %v342_v59 = vand.u32 15, %v1502_v44  ;;  %v337_v0 = vadd.s32 24, %v1502_v44 }
  0x11   : > { %509 = vmatpush.bf16.msra.mxu1 %v1275_v4  ;;  %v1263_v12 = vld [vmem:[%s313_s12] sm:$0xff]  ;;  %v1291_v19 = vld [vmem:[%s1617_s4 + $0x70] sm:$0xff]  ;;  %v1282_v20 = vld [vmem:[%s1617_s4 + $0x28] sm:$0xff]  ;;  %v349_v48 = vand.u32 15, %v335_v45  ;;  %v356_v53 = vand.u32 15, %v336_v46 }
  0x12   : > { %565 = vmatpush.bf16.msra.mxu2 %v1271_v5  ;;  %v1298_v21 = vld [vmem:[%s1617_s4 + $0xa8] sm:$0xff]  ;;  %v1281_v23 = vld [vmem:[%s1617_s4 + $0x20] sm:$0xff]  ;;  %v1280_v26 = vld [vmem:[%s1617_s4 + $0x18] sm:$0xff]  ;;  %vm1526_vm5 = vcmp.ne.s32.totalorder %v342_v59, 0 }
  0x13   : > { %683 = vmatpush.bf16.msra.mxu3 %v1283_v17  ;;  %v1290_v22 = vld [vmem:[%s1617_s4 + $0x68] sm:$0xff]  ;;  %v1297_v24 = vld [vmem:[%s1617_s4 + $0xa0] sm:$0xff]  ;;  %v1296_v27 = vld [vmem:[%s1617_s4 + $0x98] sm:$0xff]  ;;  %vm1508_vm3 = vcmp.ne.s32.totalorder %v349_v48, 15  ;;  %vm1515_vm4 = vcmp.ne.s32.totalorder %v356_v53, 0 }
  0x14   : > { %449 = vmatpush.bf16.msra.mxu0 %v1266_v6  ;;  %v1289_v25 = vld [vmem:[%s1617_s4 + $0x60] sm:$0xff]  ;;  %v1288_v28 = vld [vmem:[%s1617_s4 + $0x58] sm:$0xff]  ;;  %v1279_v29 = vld [vmem:[%s1617_s4 + $0x10] sm:$0xff] }
  0x15   : > { %510 = vmatpush.bf16.msra.mxu1 %v1274_v7  ;;  %v1295_v30 = vld [vmem:[%s1617_s4 + $0x90] sm:$0xff]  ;;  %v1278_v34 = vld [vmem:[%s1617_s4 + $0x8] sm:$0xff]  ;;  %v1277_v37 = vld [vmem:[%s1617_s4] sm:$0xff] }
  0x16   : > { %566 = vmatpush.bf16.msra.mxu2 %v1270_v8  ;;  %v1287_v31 = vld [vmem:[%s1617_s4 + $0x50] sm:$0xff]  ;;  %v1294_v35 = vld [vmem:[%s1617_s4 + $0x88] sm:$0xff]  ;;  %v1293_v38 = vld [vmem:[%s1617_s4 + $0x80] sm:$0xff] }
  0x17   : > { %684 = vmatpush.bf16.msra.mxu3 %v1282_v20  ;;  %v1286_v36 = vld [vmem:[%s1617_s4 + $0x48] sm:$0xff]  ;;  %v1285_v39 = vld [vmem:[%s1617_s4 + $0x40] sm:$0xff] }
  0x18   : > { %450 = vmatpush.bf16.msra.mxu0 %v1265_v9  ;;  %v1319_v20 = vld [vmem:[%s1616_s3] ss:$0 sm:$0xff] }
  0x19   : > { %511 = vmatpush.bf16.msra.mxu1 %v1273_v10  ;;  %v1318_v10 = vld [vmem:[%s1615_s2] ss:$0 sm:$0xff] }
  0x1a   : > { %567 = vmatpush.bf16.msra.mxu2 %v1269_v11  ;;  %v1320_v59 = vld [vmem:[%s1618_s5] ss:$0 sm:$0xff] }
  0x1b   : > { %1077 = vmatmul.msk.bf16.vlgmr.msra.gmra.mxu0 %vm436_vm0, %v1263_v12  ;;  %685 = vmatpush.bf16.msra.mxu3 %v1281_v23 }
  0x1c   : > { %1111 = vmatmul.msk.bf16.vlgmr.msra.gmra.mxu1 %vm436_vm0, %v1263_v12  ;;  %783 = vmatpush.bf16.msrb.mxu0 %v1300_v15 }
  0x1d   : > { %1129 = vmatmul.msk.bf16.vlgmr.msra.gmra.mxu2 %vm436_vm0, %v1263_v12  ;;  %862 = vmatpush.bf16.msrb.mxu1 %v1292_v16 }
  0x1e   : > { %1301 = vmatpush.bf16.msrb.mxu2 %v1300_v15 }
  0x1f   : > { %686 = vmatpush.bf16.msra.mxu3 %v1280_v26 }
  0x20   : > { %784 = vmatpush.bf16.msrb.mxu0 %v1299_v18 }
  0x21   : > { %863 = vmatpush.bf16.msrb.mxu1 %v1291_v19 }
  0x22   : > { %1302 = vmatpush.bf16.msrb.mxu2 %v1299_v18 }
  0x23   : > { %687 = vmatpush.bf16.msra.mxu3 %v1279_v29 }
  0x24   : > { %785 = vmatpush.bf16.msrb.mxu0 %v1298_v21 }
  0x25   : > { %864 = vmatpush.bf16.msrb.mxu1 %v1290_v22 }
  0x26   : > { %1303 = vmatpush.bf16.msrb.mxu2 %v1298_v21 }
  0x27   : > { %688 = vmatpush.bf16.msra.mxu3 %v1278_v34 }
  0x28   : > { %786 = vmatpush.bf16.msrb.mxu0 %v1297_v24 }
  0x29   : > { %865 = vmatpush.bf16.msrb.mxu1 %v1289_v25 }
  0x2a   : > { %1304 = vmatpush.bf16.msrb.mxu2 %v1297_v24 }
  0x2b   : > { %1078 = vmatmul.msk.bf16.gmra.mxu0 %vm436_vm0, %v1264_v13  ;;  %689 = vmatpush.bf16.msra.mxu3 %v1277_v37 }
  0x2c   : > { %1112 = vmatmul.msk.bf16.gmra.mxu1 %vm436_vm0, %v1264_v13  ;;  %787 = vmatpush.bf16.msrb.mxu0 %v1296_v27 }
  0x2d   : > { %1130 = vmatmul.msk.bf16.gmra.mxu2 %vm436_vm0, %v1264_v13  ;;  %866 = vmatpush.bf16.msrb.mxu1 %v1288_v28  ;;  %v363_v13 = vand.u32 15, %v337_v0 }
  0x2e   : > { %1305 = vmatpush.bf16.msrb.mxu2 %v1296_v27 }
  0x2f   : > { %vm1547_vm6 = vcmp.ne.s32.totalorder %v363_v13, 15 }
  0x30   : > { %788 = vmatpush.bf16.msrb.mxu0 %v1295_v30 }
  0x31   : > { %867 = vmatpush.bf16.msrb.mxu1 %v1287_v31 }
  0x32   : > { %1306 = vmatpush.bf16.msrb.mxu2 %v1295_v30 }
  0x34   : > { %789 = vmatpush.bf16.msrb.mxu0 %v1294_v35 }
  0x35   : > { %868 = vmatpush.bf16.msrb.mxu1 %v1286_v36 }
  0x36   : > { %1307 = vmatpush.bf16.msrb.mxu2 %v1294_v35 }
  0x38   : > { %790 = vmatpush.bf16.msrb.mxu0 %v1293_v38 }
  0x39   : > { %869 = vmatpush.bf16.msrb.mxu1 %v1285_v39 }
  0x3a   : > { %1308 = vmatpush.bf16.msrb.mxu2 %v1293_v38 }
  0x98   : > { %v452_v32 = vpop.f32.mrf.mxu0 }
  0x99   : > { %v1482_v33 = vpop.f32.mrf.mxu1  ;;  %v523_v58 = vrot.slane %v452_v32, 7 }
  0x9a   : > { %v579_v11 = vrot.slane %v1482_v33, 1 }
  0xa0   : > { %v569_v41 = vpop.f32.mrf.mxu2  ;;  %v454_v42 = vpop.f32.mrf.mxu0 }
  0xa1   : > { %v515_v43 = vpop.f32.mrf.mxu1  ;;  %v524_v54 = vrot.slane %v454_v42, 7 }
  0xa2   : > { %v580_v51 = vrot.slane %v515_v43, 1 }
  0xa3   : > { %v530_v61 = vsel %vm527_vm2, %v523_v58, %v524_v54 }
  0xa4   : > { %v586_v21 = vsel %vm583_vm1, %v579_v11, %v580_v51 }
  0xa8   : > { %v571_v47 = vpop.f32.mrf.mxu2  ;;  %v457_v49 = vpop.f32.mrf.mxu0 }
  0xa9   : > { %v518_v50 = vpop.f32.mrf.mxu1  ;;  %v525_v55 = vrot.slane %v457_v49, 7  ;;  %v572_v1 = vadd.f32 %v571_v47, %v530_v61 }
  0xaa   : > { %v581_v52 = vrot.slane %v518_v50, 1 }
  0xab   : > { %v529_v63 = vsel %vm527_vm2, %v524_v54, %v525_v55 }
  0xac   : > { %v585_v57 = vsel %vm583_vm1, %v580_v51, %v581_v52  ;;  %v534_v7 = vsel %vm1515_vm4, %v529_v63, 0.0  ;;  %v1321_v63 = vld [vmem:[%s1619_s6] ss:$0 sm:$0xff] }
  0xad   : > { %v589_v62 = vsel %vm1508_vm3, %v585_v57, 0.0 }
  0xae   : > { %v593_v6 = vadd.f32 %v589_v62, %v572_v1 }
  0xb0   : > { %v574_v2 = vpop.f32.mrf.mxu2  ;;  %v459_v4 = vpop.f32.mrf.mxu0  ;;  %v601_v19 = vmul.f32 %v1318_v10, %v593_v6 }
  0xb1   : > { %v520_v5 = vpop.f32.mrf.mxu1  ;;  %v526_v8 = vrot.slane %v459_v4, 7  ;;  %v575_v12 = vadd.f32 %v574_v2, %v534_v7 }
  0xb2   : > { %v582_v9 = vrot.slane %v520_v5, 1  ;;  %v609_v31 = vadd.f32 %v1319_v20, %v601_v19 }
  0xb3   : > { %v531_v14 = vsel %vm527_vm2, %v526_v8, %v523_v58  ;;  %v528_v25 = vsel %vm527_vm2, %v525_v55, %v526_v8 }
  0xb4   : > { %v584_v15 = vsel %vm583_vm1, %v581_v52, %v582_v9  ;;  %v532_v16 = vsel %vm1526_vm5, %v531_v14, 0.0  ;;  %v587_v23 = vsel %vm583_vm1, %v582_v9, %v579_v11  ;;  %v613_v37 = vmax.f32 %v609_v31, 0.0 }
  0xb5   : > { %v594_v17 = vadd.f32 %v584_v15, %v575_v12  ;;  %v570_v18 = vadd.f32 %v569_v41, %v532_v16  ;;  %v591_v29 = vsel %vm1547_vm6, %v587_v23, 0.0 }
  0xb7   : > { %v592_v24 = vadd.f32 %v586_v21, %v570_v18  ;;  %v602_v27 = vmul.f32 %v1318_v10, %v594_v17 }
  0xb8   : > { %v576_v26 = vpop.f32.mrf.mxu2 }
  0xb9   : > { %v577_v28 = vadd.f32 %v576_v26, %v528_v25  ;;  %v600_v30 = vmul.f32 %v1318_v10, %v592_v24  ;;  %v610_v35 = vadd.f32 %v1319_v20, %v602_v27 }
  0xbb   : > { %v595_v32 = vadd.f32 %v591_v29, %v577_v28  ;;  %v608_v33 = vadd.f32 %v1319_v20, %v600_v30  ;;  %v614_v40 = vmax.f32 %v610_v35, 0.0 }
  0xbd   : > { %v603_v34 = vmul.f32 %v1318_v10, %v595_v32  ;;  %v612_v36 = vmax.f32 %v608_v33, 0.0 }
  0xbf   : > { %v611_v38 = vadd.f32 %v1319_v20, %v603_v34  ;;  %v616_v39 = vpack.c.bf16 %v613_v37, %v612_v36 }
  0xc1   : > { %v615_v41 = vmax.f32 %v611_v38, 0.0  ;;  %690 = vmatmul.bf16.vlgmr.msra.gmra.mxu3 %v616_v39  ;;  %791 = vmatmul.bf16.vlgmr.msrb.gmra.mxu0 %v616_v39 }
  0xc2   : > { %870 = vmatmul.bf16.vlgmr.msrb.gmra.mxu1 %v616_v39 }
  0xc3   : > { %v617_v42 = vpack.c.bf16 %v615_v41, %v614_v40 }
  0xc5   : > { %796 = vmatmul.bf16.vlgmr.msrb.gmra.mxu2 %v617_v42 }
  0xd1   : > { %695 = vmatmul.bf16.gmra.mxu3 %v617_v42 }
  0xd2   : > { %875 = vmatmul.bf16.gmra.mxu1 %v617_v42 }
 0x13e   : > { %v792_v43 = vpop.f32.mrf.mxu0 }
 0x13f   : > { %v871_v45 = vpop.f32.mrf.mxu1  ;;  %v881_v13 = vrot.slane %v792_v43, 1 }
 0x144   : > { %v691_v46 = vpop.f32.mrf.mxu3 }
 0x145   : > { %v802_v53 = vrot.slane %v691_v46, 7 }
 0x146   : > { %v794_v47 = vpop.f32.mrf.mxu0 }
 0x147   : > { %v882_v49 = vrot.slane %v794_v47, 1  ;;  %v873_v51 = vpop.f32.mrf.mxu1 }
 0x148   : > { %v797_v48 = vpop.f32.mrf.mxu2 }
 0x149   : > { %v883_v50 = vrot.slane %v797_v48, 1  ;;  %v887_v27 = vsel %vm583_vm1, %v881_v13, %v882_v49 }
 0x14b   : > { %v886_v55 = vsel %vm583_vm1, %v882_v49, %v883_v50 }
 0x14c   : > { %v693_v52 = vpop.f32.mrf.mxu3  ;;  %v890_v61 = vsel %vm1508_vm3, %v886_v55, 0.0 }
 0x14d   : > { %v803_v54 = vrot.slane %v693_v52, 7 }
 0x14f   : > { %v808_v57 = vsel %vm527_vm2, %v802_v53, %v803_v54  ;;  %v876_v4 = vpop.f32.mrf.mxu1 }
 0x150   : > { %v874_v58 = vadd.f32 %v873_v51, %v808_v57  ;;  %v799_v0 = vpop.f32.mrf.mxu2 }
 0x151   : > { %v884_v7 = vrot.slane %v799_v0, 1 }
 0x152   : > { %v894_v62 = vadd.f32 %v890_v61, %v874_v58 }
 0x153   : > { %v885_v11 = vsel %vm583_vm1, %v883_v50, %v884_v7  ;;  %v888_v17 = vsel %vm583_vm1, %v884_v7, %v881_v13 }
 0x154   : > { %v902_v1 = vmul.f32 %v1320_v59, %v894_v62  ;;  %v696_v2 = vpop.f32.mrf.mxu3  ;;  %v892_v24 = vsel %vm1547_vm6, %v888_v17, 0.0 }
 0x155   : > { %v804_v5 = vrot.slane %v696_v2, 7 }
 0x156   : > { %v910_v6 = vadd.f32 %v1321_v63, %v902_v1 }
 0x157   : > { %v807_v56 = vsel %vm527_vm2, %v803_v54, %v804_v5  ;;  %v878_v19 = vpop.f32.mrf.mxu1 }
 0x158   : > { %v914_v8 = vmax.f32 %v910_v6, 0.0  ;;  %v812_v9 = vsel %vm1515_vm4, %v807_v56, 0.0 }
 0x159   : > { %v877_v10 = vadd.f32 %v876_v4, %v812_v9 }
 0x15a   : > { %918 = vst [vmem:[%s1573_s18 + $0x8] sm:$0xff] %v914_v8  ;;  %v922_v29 = vrot.slane %v914_v8, 1 }
 0x15b   : > { %v895_v12 = vadd.f32 %v885_v11, %v877_v10 }
 0x15c   : > { %v698_v14 = vpop.f32.mrf.mxu3 }
 0x15d   : > { %v903_v15 = vmul.f32 %v1320_v59, %v895_v12  ;;  %v805_v16 = vrot.slane %v698_v14, 7 }
 0x15f   : > { %v911_v18 = vadd.f32 %v1321_v63, %v903_v15  ;;  %v806_v20 = vsel %vm527_vm2, %v804_v5, %v805_v16  ;;  %v809_v60 = vsel %vm527_vm2, %v805_v16, %v802_v53 }
 0x160   : > { %v810_v21 = vsel %vm1526_vm5, %v809_v60, 0.0  ;;  %v879_v23 = vadd.f32 %v878_v19, %v806_v20 }
 0x161   : > { %v915_v25 = vmax.f32 %v911_v18, 0.0  ;;  %v872_v26 = vadd.f32 %v871_v45, %v810_v21 }
 0x162   : > { %v896_v28 = vadd.f32 %v892_v24, %v879_v23 }
 0x163   : > { %v923_v30 = vrot.slane %v915_v25, 1  ;;  %v893_v31 = vadd.f32 %v887_v27, %v872_v26  ;;  %919 = vst [vmem:[%s1573_s18 + $0x10] sm:$0xff] %v915_v25 }
 0x164   : > { %v904_v32 = vmul.f32 %v1320_v59, %v896_v28 }
 0x165   : > { %v926_v3 = vsel %vm583_vm1, %v922_v29, %v923_v30  ;;  %v901_v33 = vmul.f32 %v1320_v59, %v893_v31 }
 0x166   : > { %v930_v34 = vmax.f32 %v914_v8, %v926_v3  ;;  %v912_v22 = vadd.f32 %v1321_v63, %v904_v32 }
 0x167   : > { %v909_v35 = vadd.f32 %v1321_v63, %v901_v33 }
 0x168   : > { %934 = vst [vmem:[#allocation2 + $0x8] sm:$0xff] %v930_v34  ;;  %v916_v36 = vmax.f32 %v912_v22, 0.0 }
 0x169   : > { %v913_v37 = vmax.f32 %v909_v35, 0.0 }
 0x16a   : > { %920 = vst [vmem:[%s1573_s18 + $0x18] sm:$0xff] %v916_v36  ;;  %v924_v38 = vrot.slane %v916_v36, 1 }
 0x16b   : > { %917 = vst [vmem:[%s1573_s18] sm:$0xff] %v913_v37  ;;  %v921_v39 = vrot.slane %v913_v37, 1 }
 0x16c   : > { %v925_v40 = vsel %vm583_vm1, %v923_v30, %v924_v38 }
 0x16d   : > { %v927_v41 = vsel %vm583_vm1, %v921_v39, %v922_v29  ;;  %v928_v42 = vsel %vm583_vm1, %v924_v38, %v921_v39  ;;  %v931_v43 = vmax.f32 %v915_v25, %v925_v40 }
 0x16e   : > { %v929_v45 = vmax.f32 %v913_v37, %v927_v41  ;;  %v932_v46 = vmax.f32 %v916_v36, %v928_v42 }
 0x16f   : > { %935 = vst [vmem:[#allocation2 + $0x10] sm:$0xff] %v931_v43 }
 0x170   : > { %933 = vst [vmem:[#allocation2] sm:$0xff] %v929_v45 }
 0x171   : > { %936 = vst [vmem:[#allocation2 + $0x18] sm:$0xff] %v932_v46 }
 0x177   : > { %v937_v47 = vld [vmem:[#allocation2] ss:$2 sm:$0xff] }
 0x178   : > { %940 = vrot.lane.b32.xlu0 %v937_v47, %s1330_s19  ;;  %v939_v48 = vld [vmem:[#allocation2 + $0x10] ss:$2 sm:$0xff] }
 0x180   : > { %942 = vrot.lane.b32.xlu0 %v939_v48, %s1330_s19 }
 0x1ea   : > { %v941_v49 = vpop.permute.xlu0 %940 }
 0x1eb   : > { %v944_v50 = vmax.f32 %v937_v47, %v941_v49 }
 0x1ed   : > { %946 = vst [vmem:[%s326_s22] sm:$0xff] %v944_v50 }
 0x1f2   : > { %v943_v44 = vpop.permute.xlu0 %942 }
 0x1f3   : > { %v945_v51 = vmax.f32 %v939_v48, %v943_v44 }
 0x1f5   : > { %947 = vst [vmem:[%s326_s22 + $0x8] sm:$0xff] %v945_v51 }
 0x1f6 PF: > { %s19_s27 = sadd.s32 1, %s1328_s27  }
 0x1f7   : > { %p16_p4 = scmp.ge.s32.totalorder %s19_s27, 4  }
 0x1f9   :  { %18 = sbr.rel (!%p16_p4) target bundleno = 1 (0x1), region = 95 }

</bundles_post_ra>
